<compile_context>
chip_gen: v6e
topology: v6e:2x2x1
jax: 0.10.0
libtpu: 0.0.40
codegen_flags: <defaults>
</compile_context>

<pallas_src>
import functools

import jax
import jax.numpy as jnp
from jax.experimental import pallas as pl
from jax.experimental.pallas import tpu as pltpu


def _cdiv(a, b):
    return -(-a // b)


def _round_up(x, m):
    return _cdiv(x, m) * m


def _autoencoder_kernel(x_ref, we_ref, be_ref, wd_ref, bd_ref, out_ref):
    # x_ref:  (TB, D)      f32 flattened frames (one batch tile) -> cast to bf16 in-kernel
    # we_ref: (D, LATENT)  bf16 encoder weight ("x @ W" layout), VMEM-resident
    # be_ref: (1, LATENT)  f32 encoder bias
    # wd_ref: (LATENT, D)  bf16 decoder weight, VMEM-resident
    # bd_ref: (1, D)       f32 decoder bias
    # out_ref:(TB, D)      f32 (or bf16) reconstruction tile
    x = x_ref[...].astype(we_ref.dtype)

    # Encoder: bf16 MXU matmul with f32 accumulation, then f32 bias + ReLU.
    z = jnp.dot(x, we_ref[...], preferred_element_type=jnp.float32)
    z = jnp.maximum(z + be_ref[...], 0.0)

    # Decoder: bf16 MXU matmul with f32 accumulation, then f32 bias.
    y = jnp.dot(z.astype(wd_ref.dtype), wd_ref[...],
                preferred_element_type=jnp.float32) + bd_ref[...]

    # Sigmoid = 1 / (1 + exp(-y)); exp and approx-reciprocal both go to the EUP slot.
    out_ref[...] = pl.reciprocal(1.0 + jnp.exp(-y), approx=True).astype(out_ref.dtype)


@functools.partial(jax.jit, static_argnames=("tb", "out_dtype"))
def autoencoder_forward(frames, w_enc, b_enc, w_dec, b_dec, *,
                        tb=512, out_dtype=jnp.float32):
    """frames: (B, C, H, W) float32. Returns reconstruction of same shape in `out_dtype`."""
    B, C, H, W = frames.shape
    D = C * H * W
    LATENT = w_enc.shape[1]

    x = frames.reshape(B, D).astype(jnp.float32)

    # Tiny pad only up to the 8-row sublane granule (<= 7 rows).  No pad to a TB multiple:
    # the grid below is ragged and Pallas masks the edge block.
    B8 = _round_up(B, 8)
    if B8 != B:
        x = jnp.pad(x, ((0, B8 - B), (0, 0)))

    # Batch tile: at most `tb`, at most half the (8-rounded) batch so the grid has >= 2
    # "parallel" steps whenever possible (feeds both v7x TensorCores), never below 8.
    TB = min(tb, max(8, _round_up(_cdiv(B8, 2), 8)))
    num_b = _cdiv(B8, TB)

    out_bytes = jnp.dtype(out_dtype).itemsize
    cost = pl.CostEstimate(
        flops=4 * B8 * D * LATENT,            # two matmuls: 2*M*N*K each
        transcendentals=B8 * D,               # sigmoid exp
        bytes_accessed=(B8 * D * 4 + B8 * D * out_bytes
                        + w_enc.size * 2 + w_dec.size * 2
                        + (b_enc.size + b_dec.size) * 4),
    )

    # Raise scoped VMEM only if a large user-chosen TB would exceed v5e's 16 MiB default.
    vmem_needed = (2 * TB * D * 4               # x tiles, double-buffered, f32
                   + 2 * TB * D * out_bytes     # out tiles, double-buffered
                   + w_enc.size * 2 + w_dec.size * 2
                   + (b_enc.size + b_dec.size) * 4
                   + (2 << 20))                 # margin
    cp_kwargs = dict(dimension_semantics=("parallel",))
    if vmem_needed > (16 << 20):
        cp_kwargs["vmem_limit_bytes"] = int(vmem_needed)

    resident = dict(pipeline_mode=pl.Buffered(1))   # constant index_map -> single buffer

    out_flat = pl.pallas_call(
        _autoencoder_kernel,
        out_shape=jax.ShapeDtypeStruct((B8, D), out_dtype),
        grid_spec=pltpu.PrefetchScalarGridSpec(
            num_scalar_prefetch=0,
            grid=(num_b,),
            in_specs=[
                pl.BlockSpec((TB, D), lambda i: (i, 0)),                  # x: batch-tiled
                pl.BlockSpec((D, LATENT), lambda i: (0, 0), **resident),  # w_enc: resident
                pl.BlockSpec((1, LATENT), lambda i: (0, 0), **resident),  # b_enc: resident
                pl.BlockSpec((LATENT, D), lambda i: (0, 0), **resident),  # w_dec: resident
                pl.BlockSpec((1, D), lambda i: (0, 0), **resident),       # b_dec: resident
            ],
            out_specs=pl.BlockSpec((TB, D), lambda i: (i, 0)),            # lane-dense output
        ),
        compiler_params=pltpu.CompilerParams(**cp_kwargs),
        cost_estimate=cost,
    )(
        x,
        # No-ops (removed by XLA) when prepare_params already supplied bf16/f32 params.
        w_enc.astype(jnp.bfloat16), b_enc.astype(jnp.float32),
        w_dec.astype(jnp.bfloat16), b_dec.astype(jnp.float32),
    )

    return out_flat[:B].reshape(B, C, H, W)


def prepare_params(w_enc, b_enc, w_dec, b_dec):
    """One-time cast of parameters to their kernel dtypes (hoisted out of the jitted forward)."""
    return (w_enc.astype(jnp.bfloat16), b_enc.astype(jnp.float32),
            w_dec.astype(jnp.bfloat16), b_dec.astype(jnp.float32))


def init_params(key, d_in, latent):
    """Deterministic init mimicking nn.Linear's uniform(-1/sqrt(fan_in), 1/sqrt(fan_in))."""
    k1, k2, k3, k4 = jax.random.split(key, 4)
    lim_e = 1.0 / jnp.sqrt(d_in)
    lim_d = 1.0 / jnp.sqrt(latent)
    w_enc = jax.random.uniform(k1, (d_in, latent), jnp.float32, -lim_e, lim_e)
    b_enc = jax.random.uniform(k2, (1, latent), jnp.float32, -lim_e, lim_e)
    w_dec = jax.random.uniform(k3, (latent, d_in), jnp.float32, -lim_d, lim_d)
    b_dec = jax.random.uniform(k4, (1, d_in), jnp.float32, -lim_d, lim_d)
    return w_enc, b_enc, w_dec, b_dec


def reference_forward(frames, w_enc, b_enc, w_dec, b_dec):
    """Pure-JAX f32 reference of the same fused forward."""
    B = frames.shape[0]
    x = frames.reshape(B, -1)
    z = jnp.maximum(x @ w_enc + b_enc, 0.0)
    y = jax.nn.sigmoid(z @ w_dec + b_dec)
    return y.reshape(frames.shape)


if __name__ == "__main__":
    # Small shapes consistent with the module: batch=2, channels=4, spatial=16x16.
    B, C, H, W = 2, 4, 16, 16
    D = C * H * W          # 1024
    LATENT = 128

    key = jax.random.PRNGKey(0)
    k_x, k_p = jax.random.split(key)
    frames = jax.random.uniform(k_x, (B, C, H, W), jnp.float32)
    w_enc, b_enc, w_dec, b_dec = init_params(k_p, D, LATENT)

    # Cast parameters to kernel dtypes once, outside the jitted forward.
    params = prepare_params(w_enc, b_enc, w_dec, b_dec)

    out = autoencoder_forward(frames, *params)
    out = jax.block_until_ready(out)

    ref = reference_forward(frames, w_enc, b_enc, w_dec, b_dec)
    assert out.shape == (B, C, H, W)
    assert out.dtype == jnp.float32
    err = float(jnp.max(jnp.abs(out - ref)))
    # bf16 weights/activations + approx reciprocal vs f32 reference -> relaxed tolerance.
    assert err < 2e-2, err

    # Low-HBM-traffic variant: bf16 reconstruction halves the writeback stream.
    out_bf16 = jax.block_until_ready(
        autoencoder_forward(frames, *params, out_dtype=jnp.bfloat16))
    err_bf16 = float(jnp.max(jnp.abs(out_bf16.astype(jnp.float32) - ref)))
    assert out_bf16.dtype == jnp.bfloat16
    assert err_bf16 < 2e-2, err_bf16

    print("KERNEL_OK")
</pallas_src>

<mosaic_0001>
module attributes {stable_mosaic.version = 11 : i64} {
  func.func @_autoencoder_kernel(%arg0: i32, %arg1: memref<8x1024xf32, #tpu.memory_space<vmem>>, %arg2: memref<1024x128xbf16, #tpu.memory_space<vmem>>, %arg3: memref<1x128xf32, #tpu.memory_space<vmem>>, %arg4: memref<128x1024xbf16, #tpu.memory_space<vmem>>, %arg5: memref<1x1024xf32, #tpu.memory_space<vmem>>, %arg6: memref<8x1024xf32, #tpu.memory_space<vmem>>) attributes {dimension_semantics = [#tpu.dimension_semantics<parallel>], iteration_bounds = array<i64: 1>, scalar_prefetch = 0 : i64, scratch_operands = 0 : i64, tpu.core_type = #tpu.core_type<tc>, window_params = [{transform_indices = @transform_0, window_bounds = array<i64: 8, 1024>}, {pipeline_mode = #tpu.pipeline_mode<synchronous>, transform_indices = @transform_1, window_bounds = array<i64: 1024, 128>}, {pipeline_mode = #tpu.pipeline_mode<synchronous>, transform_indices = @transform_2, window_bounds = array<i64: 1, 128>}, {pipeline_mode = #tpu.pipeline_mode<synchronous>, transform_indices = @transform_3, window_bounds = array<i64: 128, 1024>}, {pipeline_mode = #tpu.pipeline_mode<synchronous>, transform_indices = @transform_4, window_bounds = array<i64: 1, 1024>}, {transform_indices = @transform_5, window_bounds = array<i64: 8, 1024>}]} {
    %c0 = arith.constant 0 : index
    %c0_0 = arith.constant 0 : index
    %0 = vector.load %arg1[%c0, %c0_0] : memref<8x1024xf32, #tpu.memory_space<vmem>>, vector<8x1024xf32>
    %1 = arith.truncf %0 : vector<8x1024xf32> to vector<8x1024xbf16>
    %c0_1 = arith.constant 0 : index
    %c0_2 = arith.constant 0 : index
    %2 = vector.load %arg2[%c0_1, %c0_2] : memref<1024x128xbf16, #tpu.memory_space<vmem>>, vector<1024x128xbf16>
    %cst = arith.constant dense<0.000000e+00> : vector<8x128xf32>
    %3 = tpu.matmul %1, %2, %cst {dimension_numbers = #tpu.dot_dimension_numbers<[1], [0], [0], [1], [0, 0, 1, 1], [], []>} : vector<8x1024xbf16>, vector<1024x128xbf16>, vector<8x128xf32> -> vector<8x128xf32>
    %c0_3 = arith.constant 0 : index
    %c0_4 = arith.constant 0 : index
    %4 = vector.load %arg3[%c0_3, %c0_4] : memref<1x128xf32, #tpu.memory_space<vmem>>, vector<1x128xf32>
    %5 = vector.broadcast %4 : vector<1x128xf32> to vector<8x128xf32>
    %6 = arith.addf %3, %5 : vector<8x128xf32>
    %cst_5 = arith.constant 0.000000e+00 : f32
    %7 = vector.broadcast %cst_5 : f32 to vector<8x128xf32>
    %8 = arith.maximumf %6, %7 : vector<8x128xf32>
    %9 = arith.truncf %8 : vector<8x128xf32> to vector<8x128xbf16>
    %c0_6 = arith.constant 0 : index
    %c0_7 = arith.constant 0 : index
    %10 = vector.load %arg4[%c0_6, %c0_7] : memref<128x1024xbf16, #tpu.memory_space<vmem>>, vector<128x1024xbf16>
    %cst_8 = arith.constant dense<0.000000e+00> : vector<8x1024xf32>
    %11 = tpu.matmul %9, %10, %cst_8 {dimension_numbers = #tpu.dot_dimension_numbers<[1], [0], [0], [1], [0, 0, 1, 1], [], []>} : vector<8x128xbf16>, vector<128x1024xbf16>, vector<8x1024xf32> -> vector<8x1024xf32>
    %c0_9 = arith.constant 0 : index
    %c0_10 = arith.constant 0 : index
    %12 = vector.load %arg5[%c0_9, %c0_10] : memref<1x1024xf32, #tpu.memory_space<vmem>>, vector<1x1024xf32>
    %13 = vector.broadcast %12 : vector<1x1024xf32> to vector<8x1024xf32>
    %14 = arith.addf %11, %13 : vector<8x1024xf32>
    %cst_11 = arith.constant 0.000000e+00 : f32
    %15 = vector.broadcast %cst_11 : f32 to vector<8x1024xf32>
    %16 = arith.subf %15, %14 : vector<8x1024xf32>
    %17 = math.exp %16 : vector<8x1024xf32>
    %cst_12 = arith.constant 1.000000e+00 : f32
    %18 = vector.broadcast %cst_12 : f32 to vector<8x1024xf32>
    %19 = arith.addf %18, %17 : vector<8x1024xf32>
    %20 = tpu.reciprocal %19 {approx = true} : vector<8x1024xf32> -> vector<8x1024xf32>
    %c0_13 = arith.constant 0 : index
    %c0_14 = arith.constant 0 : index
    %21 = vector.load %arg6[%c0_13, %c0_14] : memref<8x1024xf32, #tpu.memory_space<vmem>>, vector<8x1024xf32>
    tpu.vector_store %arg6[%c0_13, %c0_14], %20 {strides = array<i32>} : memref<8x1024xf32, #tpu.memory_space<vmem>>, vector<8x1024xf32>,
    return
  }
  func.func @transform_0(%arg0: i32) -> (i32, i32) {
    %c0_i32 = arith.constant 0 : i32
    %c0_i32_0 = arith.constant 0 : i32
    return %arg0, %c0_i32 : i32, i32
  }
  func.func @transform_1(%arg0: i32) -> (i32, i32) {
    %c0_i32 = arith.constant 0 : i32
    %c0_i32_0 = arith.constant 0 : i32
    %c0_i32_1 = arith.constant 0 : i32
    return %c0_i32, %c0_i32_0 : i32, i32
  }
  func.func @transform_2(%arg0: i32) -> (i32, i32) {
    %c0_i32 = arith.constant 0 : i32
    %c0_i32_0 = arith.constant 0 : i32
    %c0_i32_1 = arith.constant 0 : i32
    return %c0_i32, %c0_i32_0 : i32, i32
  }
  func.func @transform_3(%arg0: i32) -> (i32, i32) {
    %c0_i32 = arith.constant 0 : i32
    %c0_i32_0 = arith.constant 0 : i32
    %c0_i32_1 = arith.constant 0 : i32
    return %c0_i32, %c0_i32_0 : i32, i32
  }
  func.func @transform_4(%arg0: i32) -> (i32, i32) {
    %c0_i32 = arith.constant 0 : i32
    %c0_i32_0 = arith.constant 0 : i32
    %c0_i32_1 = arith.constant 0 : i32
    return %c0_i32, %c0_i32_0 : i32, i32
  }
  func.func @transform_5(%arg0: i32) -> (i32, i32) {
    %c0_i32 = arith.constant 0 : i32
    %c0_i32_0 = arith.constant 0 : i32
    return %arg0, %c0_i32 : i32, i32
  }
}

</mosaic_0001>

<bundles_post_ra>
// kernel: autoencoder_forward.1
= control target key start
LH: loop header
LB: loop body
LE: loop exit
PB: predicated region body
PF: predicated region fallthrough
CT: control target
= control target key end

     0   :  { %10 = vsyncpa [#allocation3], 0  ;;  %s1857_s0 = inlined_call_operand.vmem [shape: f32[8,1024], index: 0, kind: input, shape index: {}]   ;;  %s1858_s1 = inlined_call_operand.hbm [shape: bf16[1024,128], index: 1, kind: input, shape index: {}]   ;;  %s1859_s2 = inlined_call_operand.vmem [shape: f32[1,128], index: 2, kind: input, shape index: {}]   ;;  %s1860_s3 = inlined_call_operand.hbm [shape: bf16[128,1024], index: 3, kind: input, shape index: {}]   ;;  %s1861_s4 = inlined_call_operand.vmem [shape: f32[1,1024], index: 4, kind: input, shape index: {}]   ;;  %s1862_s5 = inlined_call_operand.vmem [shape: f32[8,1024], index: 5, kind: output, shape index: {}]  }
   0x1   :  { %11 = vsyncpa [#allocation5], 0  ;;  %s1754_s18 = smov [#allocation2]  }
   0x2   :  { %s19_s19 = sshll.u32 %s1754_s18, 4  ;;  %s20_s19 = int_to_ptr.vmem [resolvable:$true] %s19_s19 }
   0x3   :  { %s1718_s20 = scalar_lea.vmem %s20_s19, 8192  ;;  %p1723_p1 = scmp.lt.s32.totalorder %s20_s19, %s20_s19 }
   0x4   :  { %p1719_p0 = scmp.ne.s32.totalorder %s20_s19, %s1718_s20  ;;  %p1724_p2 = scmp.lt.s32.totalorder %s1718_s20, %s1718_s20 }
   0x6   :  { %p1725_p3 = por %p1724_p2, %p1723_p1 }
   0x8   :  { %p1726_p4 = pnand %p1725_p3, %p1719_p0 }
   0xa   :  { %1729 = shalt.err (!%p1726_p4)
}
   0xb   :  { %s1755_s21 = smov 64   ;;  %s1756_s22 = smov 4  }
   0xc   :  { %25 = dma.hbm_to_vmem [thread:$0]  %s1858_s1, 8192, %s20_s19, [#allocation3], %s1755_s21, %s1755_s21, %s1756_s22  }
   0xd   :  { %s1757_s25 = smov [#allocation4]  }
   0xe   :  { %s33_s26 = sshll.u32 %s1757_s25, 4  ;;  %s34_s26 = int_to_ptr.vmem [resolvable:$true] %s33_s26 }
   0xf   :  { %s1738_s27 = scalar_lea.vmem %s34_s26, 8192  ;;  %p1743_p6 = scmp.lt.s32.totalorder %s34_s26, %s34_s26 }
  0x10   :  { %p1739_p5 = scmp.ne.s32.totalorder %s34_s26, %s1738_s27  ;;  %p1744_p7 = scmp.lt.s32.totalorder %s1738_s27, %s1738_s27 }
  0x12   :  { %p1745_p8 = por %p1744_p7, %p1743_p6 }
  0x14   :  { %p1746_p9 = pnand %p1745_p8, %p1739_p5 }
  0x16   :  { %1749 = shalt.err (!%p1746_p9)
}
  0x17   :  { %s1758_s28 = smov 512   ;;  %s1759_s29 = smov 32  }
  0x18   :  { %39 = dma.hbm_to_vmem [thread:$0]  %s1860_s3, 8192, %s34_s26, [#allocation5], %s1758_s28, %s1758_s28, %s1759_s29  }
  0x19   :  { %1750 = dma.done.wait [#allocation3], 8192  }
  0x1a   :  { %1751 = vsyncadd [#allocation3], 4294959104 }
  0x1b   :  { %1752 = dma.done.wait [#allocation5], 8192  }
  0x1c   :  { %1753 = vsyncadd [#allocation5], 4294959104  ;;  %v1614_v0 = vld [vmem:[#allocation2 + $0x78] sm:$0xff]   ;;  %v1618_v4 = vld [vmem:[#allocation2 + $0x70] sm:$0xff]  }
  0x1d   :  { %v1615_v1 = vld [vmem:[#allocation2 + $0xf8] sm:$0xff]   ;;  %1519 = vmatprep.subr.bf16.mxu0 %v1614_v0  ;;  %v1619_v5 = vld [vmem:[#allocation2 + $0xf0] sm:$0xff]   ;;  %v1622_v8 = vld [vmem:[#allocation2 + $0x68] sm:$0xff]  }
  0x1e   :  { %v1616_v2 = vld [vmem:[#allocation2 + $0x38] sm:$0xff]   ;;  %1541 = vmatprep.subr.bf16.mxu1 %v1615_v1  ;;  %v1620_v6 = vld [vmem:[#allocation2 + $0x30] sm:$0xff]   ;;  %v1623_v9 = vld [vmem:[#allocation2 + $0xe8] sm:$0xff]  }
  0x1f   :  { %v1617_v3 = vld [vmem:[#allocation2 + $0xb8] sm:$0xff]   ;;  %1520 = vmatpush3.bf16.msra.mxu0 %v1616_v2  ;;  %v1621_v7 = vld [vmem:[#allocation2 + $0xb0] sm:$0xff]   ;;  %v1624_v10 = vld [vmem:[#allocation2 + $0x28] sm:$0xff]  }
  0x20   :  { %1542 = vmatpush3.bf16.msra.mxu1 %v1617_v3  ;;  %1521 = vmatprep.subr.bf16.mxu0 %v1618_v4  ;;  %v1625_v11 = vld [vmem:[#allocation2 + $0xa8] sm:$0xff]   ;;  %v1626_v12 = vld [vmem:[#allocation2 + $0x60] sm:$0xff]   ;;  %v1630_v16 = vld [vmem:[#allocation2 + $0x58] sm:$0xff]  }
  0x21   :  { %1543 = vmatprep.subr.bf16.mxu1 %v1619_v5  ;;  %v1627_v13 = vld [vmem:[#allocation2 + $0xe0] sm:$0xff]   ;;  %v1631_v17 = vld [vmem:[#allocation2 + $0xd8] sm:$0xff]   ;;  %v1634_v20 = vld [vmem:[#allocation2 + $0x50] sm:$0xff]  }
  0x22   :  { %v1628_v14 = vld [vmem:[#allocation2 + $0x20] sm:$0xff]   ;;  %v1632_v18 = vld [vmem:[#allocation2 + $0x18] sm:$0xff]   ;;  %v1635_v21 = vld [vmem:[#allocation2 + $0xd0] sm:$0xff]  }
  0x23   :  { %1522 = vmatpush3.bf16.msra.mxu0 %v1620_v6  ;;  %v1629_v15 = vld [vmem:[#allocation2 + $0xa0] sm:$0xff]   ;;  %v1633_v19 = vld [vmem:[#allocation2 + $0x98] sm:$0xff]   ;;  %v1636_v22 = vld [vmem:[#allocation2 + $0x10] sm:$0xff]  }
  0x24   :  { %1544 = vmatpush3.bf16.msra.mxu1 %v1621_v7  ;;  %1523 = vmatprep.subr.bf16.mxu0 %v1622_v8  ;;  %v1637_v23 = vld [vmem:[#allocation2 + $0x90] sm:$0xff]   ;;  %v1638_v24 = vld [vmem:[#allocation2 + $0x48] sm:$0xff]   ;;  %v1642_v28 = vld [vmem:[#allocation2 + $0x40] sm:$0xff]  }
  0x25   :  { %1545 = vmatprep.subr.bf16.mxu1 %v1623_v9  ;;  %v1639_v25 = vld [vmem:[#allocation2 + $0xc8] sm:$0xff]   ;;  %v1643_v29 = vld [vmem:[#allocation2 + $0xc0] sm:$0xff]   ;;  %v52_v33 = vld [vmem:[%s1857_s0 + $0x18] sm:$0xff] }
  0x26   :  { %v1640_v26 = vld [vmem:[#allocation2 + $0x8] sm:$0xff]   ;;  %v1644_v30 = vld [vmem:[#allocation2] sm:$0xff]   ;;  %v60_v36 = vpack.c.bf16 %v52_v33, %v52_v33  ;;  %v51_v38 = vld [vmem:[%s1857_s0 + $0x10] sm:$0xff] }
  0x27   :  { %1524 = vmatpush3.bf16.msra.mxu0 %v1624_v10  ;;  %v1641_v27 = vld [vmem:[#allocation2 + $0x88] sm:$0xff]   ;;  %v1645_v31 = vld [vmem:[#allocation2 + $0x80] sm:$0xff]   ;;  %v59_v39 = vpack.c.bf16 %v51_v38, %v51_v38  ;;  %v1646_v40 = vld [vmem:[#allocation2 + $0x178] sm:$0xff]  }
  0x28   :  { %1546 = vmatpush3.bf16.msra.mxu1 %v1625_v11  ;;  %1525 = vmatprep.subr.bf16.mxu0 %v1626_v12  ;;  %v50_v32 = vld [vmem:[%s1857_s0 + $0x8] sm:$0xff]  ;;  %v49_v34 = vld [vmem:[%s1857_s0] sm:$0xff]  ;;  %v1647_v41 = vld [vmem:[#allocation2 + $0x1f8] sm:$0xff]  }
  0x29   :  { %1547 = vmatprep.subr.bf16.mxu1 %v1627_v13  ;;  %v58_v35 = vpack.c.bf16 %v50_v32, %v50_v32  ;;  %v57_v37 = vpack.c.bf16 %v49_v34, %v49_v34  ;;  %656 = vmatprep.mubr.bf16.mxu1 %v60_v36  ;;  %v1648_v42 = vld [vmem:[#allocation2 + $0x138] sm:$0xff]   ;;  %v1650_v44 = vld [vmem:[#allocation2 + $0x170] sm:$0xff]   ;;  %v1654_v48 = vld [vmem:[#allocation2 + $0x168] sm:$0xff]  }
  0x2a   :  { %v1649_v43 = vld [vmem:[#allocation2 + $0x1b8] sm:$0xff]   ;;  %v1651_v45 = vld [vmem:[#allocation2 + $0x1f0] sm:$0xff]   ;;  %v1655_v49 = vld [vmem:[#allocation2 + $0x1e8] sm:$0xff]  }
  0x2b   :  { %1526 = vmatpush3.bf16.msra.mxu0 %v1628_v14  ;;  %616 = vmatprep.mubr.bf16.mxu0 %v58_v35  ;;  %v1652_v46 = vld [vmem:[#allocation2 + $0x130] sm:$0xff]   ;;  %v1656_v50 = vld [vmem:[#allocation2 + $0x128] sm:$0xff]   ;;  %v1658_v52 = vld [vmem:[#allocation2 + $0x160] sm:$0xff]  }
  0x2c   :  { %1548 = vmatpush3.bf16.msra.mxu1 %v1629_v15  ;;  %1527 = vmatprep.subr.bf16.mxu0 %v1630_v16  ;;  %v1653_v47 = vld [vmem:[#allocation2 + $0x1b0] sm:$0xff]   ;;  %v1657_v51 = vld [vmem:[#allocation2 + $0x1a8] sm:$0xff]   ;;  %v1659_v53 = vld [vmem:[#allocation2 + $0x1e0] sm:$0xff]  }
  0x2d   :  { %1549 = vmatprep.subr.bf16.mxu1 %v1631_v17  ;;  %v1660_v54 = vld [vmem:[#allocation2 + $0x120] sm:$0xff]   ;;  %v1662_v56 = vld [vmem:[#allocation2 + $0x158] sm:$0xff]   ;;  %v1666_v60 = vld [vmem:[#allocation2 + $0x150] sm:$0xff]  }
  0x2e   :  { %v1661_v55 = vld [vmem:[#allocation2 + $0x1a0] sm:$0xff]   ;;  %v1663_v57 = vld [vmem:[#allocation2 + $0x1d8] sm:$0xff]   ;;  %v1667_v61 = vld [vmem:[#allocation2 + $0x1d0] sm:$0xff]  }
  0x2f   :  { %1528 = vmatpush3.bf16.msra.mxu0 %v1632_v18  ;;  %v1664_v58 = vld [vmem:[#allocation2 + $0x118] sm:$0xff]   ;;  %v1668_v62 = vld [vmem:[#allocation2 + $0x110] sm:$0xff]   ;;  %v1670_v0 = vld [vmem:[#allocation2 + $0x148] sm:$0xff]  }
  0x30   :  { %1550 = vmatpush3.bf16.msra.mxu1 %v1633_v19  ;;  %1529 = vmatprep.subr.bf16.mxu0 %v1634_v20  ;;  %v1665_v59 = vld [vmem:[#allocation2 + $0x198] sm:$0xff]   ;;  %v1669_v63 = vld [vmem:[#allocation2 + $0x190] sm:$0xff]   ;;  %v1671_v1 = vld [vmem:[#allocation2 + $0x1c8] sm:$0xff]  }
  0x31   :  { %1551 = vmatprep.subr.bf16.mxu1 %v1635_v21  ;;  %v1672_v2 = vld [vmem:[#allocation2 + $0x108] sm:$0xff]   ;;  %v1674_v4 = vld [vmem:[#allocation2 + $0x140] sm:$0xff]   ;;  %v56_v9 = vld [vmem:[%s1857_s0 + $0x38] sm:$0xff] }
  0x32   :  { %v1673_v3 = vld [vmem:[#allocation2 + $0x188] sm:$0xff]   ;;  %v1675_v5 = vld [vmem:[#allocation2 + $0x1c0] sm:$0xff]   ;;  %v64_v11 = vpack.c.bf16 %v56_v9, %v56_v9  ;;  %v55_v13 = vld [vmem:[%s1857_s0 + $0x30] sm:$0xff] }
  0x33   :  { %1530 = vmatpush3.bf16.msra.mxu0 %v1636_v22  ;;  %v1676_v6 = vld [vmem:[#allocation2 + $0x100] sm:$0xff]   ;;  %v54_v8 = vld [vmem:[%s1857_s0 + $0x28] sm:$0xff]  ;;  %v63_v15 = vpack.c.bf16 %v55_v13, %v55_v13 }
  0x34   :  { %1552 = vmatpush3.bf16.msra.mxu1 %v1637_v23  ;;  %1531 = vmatprep.subr.bf16.mxu0 %v1638_v24  ;;  %v1677_v7 = vld [vmem:[#allocation2 + $0x180] sm:$0xff]   ;;  %v62_v10 = vpack.c.bf16 %v54_v8, %v54_v8  ;;  %v803_v18 = vld [vmem:[#allocation4 + $0x1c8] sm:$0xff] }
  0x35   :  { %1553 = vmatprep.subr.bf16.mxu1 %v1639_v25  ;;  %v53_v12 = vld [vmem:[%s1857_s0 + $0x20] sm:$0xff]  ;;  %v807_v21 = vld [vmem:[#allocation4 + $0x1e8] sm:$0xff] }
  0x36   :  { %v61_v14 = vpack.c.bf16 %v53_v12, %v53_v12  ;;  %v802_v16 = vld [vmem:[#allocation4 + $0x1c0] sm:$0xff]  ;;  %v1513_v24 = vcombine.low %v803_v18, %v807_v21  ;;  %v1514_v25 = vcombine.high %v803_v18, %v807_v21  ;;  %v787_v32 = vld [vmem:[#allocation4 + $0x148] sm:$0xff]  ;;  %v805_v18 = vld [vmem:[#allocation4 + $0x1d8] sm:$0xff] }
  0x37   :  { %1532 = vmatpush3.bf16.msra.mxu0 %v1640_v26  ;;  %v806_v17 = vld [vmem:[#allocation4 + $0x1e0] sm:$0xff]  ;;  %v791_v33 = vld [vmem:[#allocation4 + $0x168] sm:$0xff]  ;;  %v809_v21 = vld [vmem:[#allocation4 + $0x1f8] sm:$0xff] }
  0x38   :  { %1554 = vmatpush3.bf16.msra.mxu1 %v1641_v27  ;;  %1533 = vmatprep.subr.bf16.mxu0 %v1642_v28  ;;  %v1511_v19 = vcombine.low %v802_v16, %v806_v17  ;;  %v1512_v20 = vcombine.high %v802_v16, %v806_v17  ;;  %v794_v22 = vld [vmem:[#allocation4 + $0x180] sm:$0xff]  ;;  %v795_v27 = vld [vmem:[#allocation4 + $0x188] sm:$0xff]  ;;  %v804_v16 = vld [vmem:[#allocation4 + $0x1d0] sm:$0xff] }
  0x39   :  { %1555 = vmatprep.subr.bf16.mxu1 %v1643_v29  ;;  %v798_v23 = vld [vmem:[#allocation4 + $0x1a0] sm:$0xff]  ;;  %v799_v28 = vld [vmem:[#allocation4 + $0x1a8] sm:$0xff]  ;;  %v808_v17 = vld [vmem:[#allocation4 + $0x1f0] sm:$0xff] }
  0x3a   :  { %v1504_v26 = vcombine.high %v794_v22, %v798_v23  ;;  %v786_v29 = vld [vmem:[#allocation4 + $0x140] sm:$0xff]  ;;  %v1503_v34 = vcombine.low %v794_v22, %v798_v23  ;;  %v1505_v35 = vcombine.low %v795_v27, %v799_v28  ;;  %v751_v12 = vld [vmem:[#allocation4 + $0x28] sm:$0xff]  ;;  %v1760_v22 = vmov 0  }
  0x3b   :  { %1534 = vmatpush3.bf16.msra.mxu0 %v1644_v30  ;;  %v1506_v30 = vcombine.high %v795_v27, %v799_v28  ;;  %v778_v38 = vld [vmem:[#allocation4 + $0x100] sm:$0xff]  ;;  %v1517_v23 = vcombine.low %v805_v18, %v809_v21 }
  0x3c   :  { %1556 = vmatpush3.bf16.msra.mxu1 %v1645_v31  ;;  %1563 = vmatprep.subr.bf16.mxu0 %v1646_v40  ;;  %v790_v31 = vld [vmem:[#allocation4 + $0x160] sm:$0xff]  ;;  %v779_v40 = vld [vmem:[#allocation4 + $0x108] sm:$0xff] }
  0x3d   :  { %1585 = vmatprep.subr.bf16.mxu1 %v1647_v41  ;;  %v1496_v36 = vcombine.high %v786_v29, %v790_v31  ;;  %v783_v41 = vld [vmem:[#allocation4 + $0x128] sm:$0xff]  ;;  %v746_v8 = vld [vmem:[#allocation4] sm:$0xff] }
  0x3e   :  { %617 = vmatmul.mubr.bf16.vlgmr.msra.gmra.mxu0 %v57_v37  ;;  %v1498_v37 = vcombine.high %v787_v32, %v791_v33  ;;  %v750_v9 = vld [vmem:[#allocation4 + $0x20] sm:$0xff] }
  0x3f   :  { %657 = vmatmul.mubr.bf16.vlgmr.msra.gmra.mxu1 %v59_v39  ;;  %1564 = vmatpush3.bf16.msra.mxu0 %v1648_v42  ;;  %v782_v39 = vld [vmem:[#allocation4 + $0x120] sm:$0xff]  ;;  %v1495_v42 = vcombine.low %v786_v29, %v790_v31  ;;  %v1455_v13 = vcombine.low %v746_v8, %v750_v9 }
  0x40   :  { %1586 = vmatpush3.bf16.msra.mxu1 %v1649_v43  ;;  %1565 = vmatprep.subr.bf16.mxu0 %v1650_v44  ;;  %v1497_v43 = vcombine.low %v787_v32, %v791_v33  ;;  %v1488_v44 = vcombine.high %v778_v38, %v782_v39 }
  0x41   :  { %1587 = vmatprep.subr.bf16.mxu1 %v1651_v45  ;;  %696 = vmatprep.mubr.bf16.mxu0 %v62_v10  ;;  %v1490_v45 = vcombine.high %v779_v40, %v783_v41  ;;  %v747_v10 = vld [vmem:[#allocation4 + $0x8] sm:$0xff] }
  0x42   :  { %736 = vmatprep.mubr.bf16.mxu1 %v64_v11  ;;  %v1456_v11 = vcombine.high %v746_v8, %v750_v9 }
  0x43   :  { %1566 = vmatpush3.bf16.msra.mxu0 %v1652_v46  ;;  %v770_v46 = vld [vmem:[#allocation4 + $0xc0] sm:$0xff] }
  0x44   :  { %1588 = vmatpush3.bf16.msra.mxu1 %v1653_v47  ;;  %1567 = vmatprep.subr.bf16.mxu0 %v1654_v48  ;;  %v774_v47 = vld [vmem:[#allocation4 + $0xe0] sm:$0xff]  ;;  %v771_v48 = vld [vmem:[#allocation4 + $0xc8] sm:$0xff] }
  0x45   :  { %1589 = vmatprep.subr.bf16.mxu1 %v1655_v49  ;;  %v775_v49 = vld [vmem:[#allocation4 + $0xe8] sm:$0xff] }
  0x47   :  { %1568 = vmatpush3.bf16.msra.mxu0 %v1656_v50  ;;  %v1487_v50 = vcombine.low %v778_v38, %v782_v39 }
  0x48   :  { %1590 = vmatpush3.bf16.msra.mxu1 %v1657_v51  ;;  %1569 = vmatprep.subr.bf16.mxu0 %v1658_v52  ;;  %v1489_v51 = vcombine.low %v779_v40, %v783_v41  ;;  %v1480_v52 = vcombine.high %v770_v46, %v774_v47 }
  0x49   :  { %1591 = vmatprep.subr.bf16.mxu1 %v1659_v53  ;;  %v1482_v53 = vcombine.high %v771_v48, %v775_v49 }
  0x4b   :  { %1570 = vmatpush3.bf16.msra.mxu0 %v1660_v54  ;;  %v1479_v54 = vcombine.low %v770_v46, %v774_v47 }
  0x4c   :  { %1592 = vmatpush3.bf16.msra.mxu1 %v1661_v55  ;;  %1571 = vmatprep.subr.bf16.mxu0 %v1662_v56  ;;  %v1481_v55 = vcombine.low %v771_v48, %v775_v49  ;;  %v762_v56 = vld [vmem:[#allocation4 + $0x80] sm:$0xff] }
  0x4d   :  { %1593 = vmatprep.subr.bf16.mxu1 %v1663_v57  ;;  %v766_v57 = vld [vmem:[#allocation4 + $0xa0] sm:$0xff] }
  0x4f   :  { %1572 = vmatpush3.bf16.msra.mxu0 %v1664_v58  ;;  %v763_v58 = vld [vmem:[#allocation4 + $0x88] sm:$0xff] }
  0x50   :  { %1594 = vmatpush3.bf16.msra.mxu1 %v1665_v59  ;;  %1573 = vmatprep.subr.bf16.mxu0 %v1666_v60  ;;  %v1472_v59 = vcombine.high %v762_v56, %v766_v57  ;;  %v767_v60 = vld [vmem:[#allocation4 + $0xa8] sm:$0xff] }
  0x51   :  { %1595 = vmatprep.subr.bf16.mxu1 %v1667_v61  ;;  %v1471_v61 = vcombine.low %v762_v56, %v766_v57 }
  0x53   :  { %1574 = vmatpush3.bf16.msra.mxu0 %v1668_v62  ;;  %v1473_v62 = vcombine.low %v763_v58, %v767_v60 }
  0x54   :  { %1596 = vmatpush3.bf16.msra.mxu1 %v1669_v63  ;;  %1575 = vmatprep.subr.bf16.mxu0 %v1670_v0  ;;  %v1474_v63 = vcombine.high %v763_v58, %v767_v60  ;;  %v754_v0 = vld [vmem:[#allocation4 + $0x40] sm:$0xff]  ;;  %v788_v58 = vld [vmem:[#allocation4 + $0x150] sm:$0xff]  ;;  %v789_v60 = vld [vmem:[#allocation4 + $0x158] sm:$0xff] }
  0x55   :  { %1597 = vmatprep.subr.bf16.mxu1 %v1671_v1  ;;  %v758_v1 = vld [vmem:[#allocation4 + $0x60] sm:$0xff] }
  0x57   :  { %1576 = vmatpush3.bf16.msra.mxu0 %v1672_v2  ;;  %v755_v2 = vld [vmem:[#allocation4 + $0x48] sm:$0xff] }
  0x58   :  { %1598 = vmatpush3.bf16.msra.mxu1 %v1673_v3  ;;  %1577 = vmatprep.subr.bf16.mxu0 %v1674_v4  ;;  %v1464_v3 = vcombine.high %v754_v0, %v758_v1  ;;  %v759_v4 = vld [vmem:[#allocation4 + $0x68] sm:$0xff] }
  0x59   :  { %1599 = vmatprep.subr.bf16.mxu1 %v1675_v5  ;;  %v1463_v5 = vcombine.low %v754_v0, %v758_v1 }
  0x5b   :  { %1578 = vmatpush3.bf16.msra.mxu0 %v1676_v6  ;;  %v1465_v6 = vcombine.low %v755_v2, %v759_v4 }
  0x5c   :  { %1600 = vmatpush3.bf16.msra.mxu1 %v1677_v7  ;;  %1172 = vmatprep.subr.bf16.mxu0 %v1512_v20  ;;  %v1466_v7 = vcombine.high %v755_v2, %v759_v4  ;;  %v1516_v20 = vcombine.high %v804_v16, %v808_v17  ;;  %v780_v2 = vld [vmem:[#allocation4 + $0x110] sm:$0xff]  ;;  %v781_v4 = vld [vmem:[#allocation4 + $0x118] sm:$0xff] }
  0x5d   :  { %1213 = vmatprep.subr.bf16.mxu1 %v1514_v25 }
  0x5e   :  { %697 = vmatmul.mubr.bf16.vlgmr.msra.gmra.mxu0 %v61_v14  ;;  %v1457_v14 = vcombine.low %v747_v10, %v751_v12 }
  0x5f   :  { %737 = vmatmul.mubr.bf16.vlgmr.msra.gmra.mxu1 %v63_v15  ;;  %1173 = vmatpush1.bf16.msra.mxu0 %v1511_v19  ;;  %v1458_v15 = vcombine.high %v747_v10, %v751_v12  ;;  %v1515_v19 = vcombine.low %v804_v16, %v808_v17  ;;  %v772_v10 = vld [vmem:[#allocation4 + $0xd0] sm:$0xff]  ;;  %v773_v12 = vld [vmem:[#allocation4 + $0xd8] sm:$0xff] }
  0x60   :  { %1214 = vmatpush1.bf16.msra.mxu1 %v1513_v24  ;;  %1174 = vmatprep.subr.bf16.mxu0 %v1504_v26  ;;  %v1518_v24 = vcombine.high %v805_v18, %v809_v21  ;;  %v764_v18 = vld [vmem:[#allocation4 + $0x90] sm:$0xff]  ;;  %v769_v21 = vld [vmem:[#allocation4 + $0xb8] sm:$0xff] }
  0x61   :  { %1215 = vmatprep.subr.bf16.mxu1 %v1506_v30  ;;  %1204 = vmatprep.mubr.bf16.mxu0 %v1760_v22 }
  0x62   :  { %1245 = vmatprep.mubr.bf16.mxu1 %v1760_v22 }
  0x63   :  { %1175 = vmatpush1.bf16.msra.mxu0 %v1503_v34  ;;  %v1390_v34 = vld [vmem:[%s1859_s2] ss:$0 sm:$0xff] }
  0x64   :  { %1216 = vmatpush1.bf16.msra.mxu1 %v1505_v35  ;;  %1176 = vmatprep.subr.bf16.mxu0 %v1496_v36 }
  0x65   :  { %1217 = vmatprep.subr.bf16.mxu1 %v1498_v37 }
  0x67   :  { %1177 = vmatpush1.bf16.msra.mxu0 %v1495_v42 }
  0x68   :  { %1218 = vmatpush1.bf16.msra.mxu1 %v1497_v43  ;;  %1178 = vmatprep.subr.bf16.mxu0 %v1488_v44 }
  0x69   :  { %1219 = vmatprep.subr.bf16.mxu1 %v1490_v45 }
  0x6b   :  { %1179 = vmatpush1.bf16.msra.mxu0 %v1487_v50  ;;  %v796_v50 = vld [vmem:[#allocation4 + $0x190] sm:$0xff] }
  0x6c   :  { %1220 = vmatpush1.bf16.msra.mxu1 %v1489_v51  ;;  %1180 = vmatprep.subr.bf16.mxu0 %v1480_v52  ;;  %v800_v51 = vld [vmem:[#allocation4 + $0x1b0] sm:$0xff]  ;;  %v797_v52 = vld [vmem:[#allocation4 + $0x198] sm:$0xff] }
  0x6d   :  { %1221 = vmatprep.subr.bf16.mxu1 %v1482_v53  ;;  %v801_v53 = vld [vmem:[#allocation4 + $0x1b8] sm:$0xff]  ;;  %v1508_v56 = vcombine.high %v796_v50, %v800_v51 }
  0x6e   :  { %v1510_v57 = vcombine.high %v797_v52, %v801_v53 }
  0x6f   :  { %1181 = vmatpush1.bf16.msra.mxu0 %v1479_v54 }
  0x70   :  { %1222 = vmatpush1.bf16.msra.mxu1 %v1481_v55  ;;  %1182 = vmatprep.subr.bf16.mxu0 %v1472_v59  ;;  %v792_v59 = vld [vmem:[#allocation4 + $0x170] sm:$0xff] }
  0x71   :  { %1223 = vmatprep.subr.bf16.mxu1 %v1474_v63  ;;  %v1509_v63 = vcombine.low %v797_v52, %v801_v53  ;;  %v1500_v0 = vcombine.high %v788_v58, %v792_v59 }
  0x73   :  { %1183 = vmatpush1.bf16.msra.mxu0 %v1471_v61  ;;  %v793_v61 = vld [vmem:[#allocation4 + $0x178] sm:$0xff] }
  0x74   :  { %1224 = vmatpush1.bf16.msra.mxu1 %v1473_v62  ;;  %1184 = vmatprep.subr.bf16.mxu0 %v1464_v3  ;;  %v1507_v62 = vcombine.low %v796_v50, %v800_v51  ;;  %v1502_v1 = vcombine.high %v789_v60, %v793_v61  ;;  %v784_v3 = vld [vmem:[#allocation4 + $0x130] sm:$0xff] }
  0x75   :  { %1225 = vmatprep.subr.bf16.mxu1 %v1466_v7  ;;  %v1501_v7 = vcombine.low %v789_v60, %v793_v61  ;;  %v1492_v8 = vcombine.high %v780_v2, %v784_v3 }
  0x77   :  { %1185 = vmatpush1.bf16.msra.mxu0 %v1463_v5  ;;  %v785_v5 = vld [vmem:[#allocation4 + $0x138] sm:$0xff] }
  0x78   :  { %1226 = vmatpush1.bf16.msra.mxu1 %v1465_v6  ;;  %1186 = vmatprep.subr.bf16.mxu0 %v1456_v11  ;;  %v1499_v6 = vcombine.low %v788_v58, %v792_v59  ;;  %v1494_v9 = vcombine.high %v781_v4, %v785_v5  ;;  %v776_v11 = vld [vmem:[#allocation4 + $0xf0] sm:$0xff] }
  0x79   :  { %1227 = vmatprep.subr.bf16.mxu1 %v1458_v15  ;;  %v1493_v15 = vcombine.low %v781_v4, %v785_v5  ;;  %v1484_v16 = vcombine.high %v772_v10, %v776_v11 }
  0x7b   :  { %1187 = vmatpush1.bf16.msra.mxu0 %v1455_v13  ;;  %v777_v13 = vld [vmem:[#allocation4 + $0xf8] sm:$0xff] }
  0x7c   :  { %1228 = vmatpush1.bf16.msra.mxu1 %v1457_v14  ;;  %1254 = vmatprep.subr.bf16.mxu0 %v1516_v20  ;;  %v1491_v14 = vcombine.low %v780_v2, %v784_v3  ;;  %v1486_v17 = vcombine.high %v773_v12, %v777_v13  ;;  %v765_v20 = vld [vmem:[#allocation4 + $0x98] sm:$0xff] }
  0x7d   :  { %1295 = vmatprep.subr.bf16.mxu1 %v1518_v24 }
  0xfe   :  { %v1535_v25 = vpop.f32.mrf.mxu0 }
  0xff   :  { %v1557_v26 = vpop.f32.mrf.mxu1 }
 0x100   :  { %v1536_v27 = vpop.f32.mrf.mxu0 }
 0x101   :  { %v1558_v28 = vpop.f32.mrf.mxu1  ;;  %v1537_v33 = vadd.f32 %v1536_v27, %v1535_v25  ;;  %v1478_v25 = vcombine.high %v765_v20, %v769_v21  ;;  %v760_v27 = vld [vmem:[#allocation4 + $0x70] sm:$0xff] }
 0x102   :  { %v1538_v29 = vpop.f32.mrf.mxu0  ;;  %v1559_v36 = vadd.f32 %v1558_v28, %v1557_v26  ;;  %v756_v26 = vld [vmem:[#allocation4 + $0x50] sm:$0xff]  ;;  %v757_v28 = vld [vmem:[#allocation4 + $0x58] sm:$0xff] }
 0x103   :  { %v1560_v30 = vpop.f32.mrf.mxu1  ;;  %v619_v35 = vadd.f32 %v1537_v33, %v1390_v34  ;;  %v761_v29 = vld [vmem:[#allocation4 + $0x78] sm:$0xff]  ;;  %v748_v34 = vld [vmem:[#allocation4 + $0x10] sm:$0xff] }
 0x104   :  { %v1539_v31 = vpop.f32.mrf.mxu0  ;;  %v1470_v33 = vcombine.high %v757_v28, %v761_v29 }
 0x105   :  { %v1561_v32 = vpop.f32.mrf.mxu1  ;;  %v659_v40 = vadd.f32 %v1559_v36, %v619_v35  ;;  %v1477_v31 = vcombine.low %v765_v20, %v769_v21  ;;  %v752_v35 = vld [vmem:[#allocation4 + $0x30] sm:$0xff]  ;;  %v749_v36 = vld [vmem:[#allocation4 + $0x18] sm:$0xff] }
 0x106   :  { %v1468_v32 = vcombine.high %v756_v26, %v760_v27 }
 0x11e   :  { %v1579_v37 = vpop.f32.mrf.mxu0 }
 0x11f   :  { %v1601_v38 = vpop.f32.mrf.mxu1 }
 0x120   :  { %v1580_v39 = vpop.f32.mrf.mxu0 }
 0x121   :  { %v1581_v41 = vadd.f32 %v1580_v39, %v1579_v37  ;;  %v1602_v42 = vpop.f32.mrf.mxu1  ;;  %v753_v37 = vld [vmem:[#allocation4 + $0x38] sm:$0xff]  ;;  %v1469_v39 = vcombine.low %v757_v28, %v761_v29 }
 0x122   :  { %v1582_v43 = vpop.f32.mrf.mxu0  ;;  %v1603_v45 = vadd.f32 %v1602_v42, %v1601_v38  ;;  %v1467_v38 = vcombine.low %v756_v26, %v760_v27  ;;  %v1459_v42 = vcombine.low %v748_v34, %v752_v35 }
 0x123   :  { %v699_v44 = vadd.f32 %v1581_v41, %v659_v40  ;;  %v1604_v46 = vpop.f32.mrf.mxu1  ;;  %v1460_v40 = vcombine.high %v748_v34, %v752_v35  ;;  %v1462_v41 = vcombine.high %v749_v36, %v753_v37  ;;  %v1461_v43 = vcombine.low %v749_v36, %v753_v37 }
 0x124   :  { %v1583_v47 = vpop.f32.mrf.mxu0 }
 0x125   :  { %v739_v48 = vadd.f32 %v1603_v45, %v699_v44  ;;  %v1605_v49 = vpop.f32.mrf.mxu1  ;;  %v812_v44 = vlaneseq }
 0x127   :  { %v744_v54 = vmax.f32 %v739_v48, 0.0  ;;  %v813_v45 = vshrl.u32 %v812_v44, 7  ;;  %v810_v48 = vld [vmem:[%s1861_s4] sm:$0xff] }
 0x129   :  { %v1824_v55 = vpack.c.bf16 %v744_v54, %v744_v54  ;;  %v814_v46 = vsub.s32 0, %v813_v45  ;;  %v822_v47 = vsub.s32 2, %v813_v45  ;;  %v818_v49 = vsub.s32 1, %v813_v45 }
 0x12a   :  { %v826_v50 = vsub.s32 3, %v813_v45  ;;  %v838_v20 = vsub.s32 6, %v813_v45  ;;  %v834_v21 = vsub.s32 5, %v813_v45 }
 0x12b   :  { %1205 = vmatmul.mubr.bf16.vlgmr.msra.gmra.mxu0 %v1824_v55  ;;  %1246 = vmatmul.mubr.bf16.vlgmr.msra.gmra.mxu1 %v1824_v55  ;;  %v815_v51 = vrot.slane %v810_v48, %v814_v46  ;;  %v823_v52 = vrot.slane %v810_v48, %v822_v47  ;;  %v819_v53 = vrot.slane %v810_v48, %v818_v49 }
 0x12c   :  { %1255 = vmatpush1.bf16.msra.mxu0 %v1515_v19  ;;  %1296 = vmatpush1.bf16.msra.mxu1 %v1517_v23  ;;  %v768_v19 = vld [vmem:[#allocation4 + $0xb0] sm:$0xff]  ;;  %v1485_v23 = vcombine.low %v773_v12, %v777_v13  ;;  %v827_v54 = vrot.slane %v810_v48, %v826_v50 }
 0x12d   :  { %1256 = vmatprep.subr.bf16.mxu0 %v1508_v56  ;;  %1297 = vmatprep.subr.bf16.mxu1 %v1510_v57  ;;  %v1476_v24 = vcombine.high %v764_v18, %v768_v19  ;;  %v1475_v30 = vcombine.low %v764_v18, %v768_v19  ;;  %v830_v19 = vsub.s32 4, %v813_v45 }
 0x12e   :  { %1286 = vmatprep.mubr.bf16.mxu0 %v1760_v22  ;;  %1327 = vmatprep.mubr.bf16.mxu1 %v1760_v22  ;;  %v1483_v22 = vcombine.low %v772_v10, %v776_v11 }
 0x130   :  { %1257 = vmatpush1.bf16.msra.mxu0 %v1507_v62  ;;  %1298 = vmatpush1.bf16.msra.mxu1 %v1509_v63 }
 0x131   :  { %1258 = vmatprep.subr.bf16.mxu0 %v1500_v0  ;;  %1299 = vmatprep.subr.bf16.mxu1 %v1502_v1 }
 0x134   :  { %1259 = vmatpush1.bf16.msra.mxu0 %v1499_v6  ;;  %1300 = vmatpush1.bf16.msra.mxu1 %v1501_v7 }
 0x135   :  { %1260 = vmatprep.subr.bf16.mxu0 %v1492_v8  ;;  %1301 = vmatprep.subr.bf16.mxu1 %v1494_v9 }
 0x138   :  { %1261 = vmatpush1.bf16.msra.mxu0 %v1491_v14  ;;  %1302 = vmatpush1.bf16.msra.mxu1 %v1493_v15 }
 0x139   :  { %1262 = vmatprep.subr.bf16.mxu0 %v1484_v16  ;;  %1303 = vmatprep.subr.bf16.mxu1 %v1486_v17 }
 0x13c   :  { %1263 = vmatpush1.bf16.msra.mxu0 %v1483_v22  ;;  %1304 = vmatpush1.bf16.msra.mxu1 %v1485_v23  ;;  %v842_v22 = vsub.s32 7, %v813_v45  ;;  %v831_v23 = vrot.slane %v810_v48, %v830_v19 }
 0x13d   :  { %1264 = vmatprep.subr.bf16.mxu0 %v1476_v24  ;;  %1305 = vmatprep.subr.bf16.mxu1 %v1478_v25  ;;  %v839_v24 = vrot.slane %v810_v48, %v838_v20  ;;  %v835_v25 = vrot.slane %v810_v48, %v834_v21 }
 0x13e   :  { %v843_v26 = vrot.slane %v810_v48, %v842_v22 }
 0x140   :  { %1265 = vmatpush1.bf16.msra.mxu0 %v1475_v30  ;;  %1306 = vmatpush1.bf16.msra.mxu1 %v1477_v31 }
 0x141   :  { %1266 = vmatprep.subr.bf16.mxu0 %v1468_v32  ;;  %1307 = vmatprep.subr.bf16.mxu1 %v1470_v33 }
 0x144   :  { %1267 = vmatpush1.bf16.msra.mxu0 %v1467_v38  ;;  %1308 = vmatpush1.bf16.msra.mxu1 %v1469_v39 }
 0x145   :  { %1268 = vmatprep.subr.bf16.mxu0 %v1460_v40  ;;  %1309 = vmatprep.subr.bf16.mxu1 %v1462_v41 }
 0x148   :  { %1269 = vmatpush1.bf16.msra.mxu0 %v1459_v42  ;;  %1310 = vmatpush1.bf16.msra.mxu1 %v1461_v43 }
 0x14b   :  { %1287 = vmatmul.mubr.bf16.vlgmr.msra.gmra.mxu0 %v1824_v55  ;;  %1328 = vmatmul.mubr.bf16.vlgmr.msra.gmra.mxu1 %v1824_v55 }
 0x1eb   :  { %v1206_v56 = vpop.f32.mrf.mxu0  ;;  %v1247_v57 = vpop.f32.mrf.mxu1 }
 0x1ec   :  { %v1207_v58 = vadd.f32 %v1206_v56, %v815_v51  ;;  %v1248_v59 = vadd.f32 %v1247_v57, %v823_v52 }
 0x1ed   :  { %v1208_v60 = vpop.f32.mrf.mxu0  ;;  %v1249_v55 = vpop.f32.mrf.mxu1 }
 0x1ee   :  { %v1336_v61 = vsub.f32 0.0, %v1207_v58  ;;  %v1338_v62 = vsub.f32 0.0, %v1248_v59  ;;  %v1209_v63 = vadd.f32 %v1208_v60, %v819_v53  ;;  %v1250_v0 = vadd.f32 %v1249_v55, %v827_v54 }
 0x1ef   :  { %v1210_v1 = vpop.f32.mrf.mxu0  ;;  %v1251_v2 = vpop.f32.mrf.mxu1 }
 0x1f0   :  { %v1344_v3 = vmul.f32 1.442695, %v1336_v61  ;;  %v1348_v4 = vmul.f32 1.442695, %v1338_v62  ;;  %v1337_v5 = vsub.f32 0.0, %v1209_v63  ;;  %v1339_v6 = vsub.f32 0.0, %v1250_v0 }
 0x1f1   :  { %v1211_v7 = vpop.f32.mrf.mxu0  ;;  %v1252_v8 = vpop.f32.mrf.mxu1 }
 0x1f2   :  { %1678 = vpow2.f32 %v1344_v3  ;;  %v1346_v9 = vmul.f32 1.442695, %v1337_v5  ;;  %v1350_v10 = vmul.f32 1.442695, %v1339_v6 }
 0x1f3   :  { %1680 = vpow2.f32 %v1348_v4 }
 0x1f4   :  { %1682 = vpow2.f32 %v1346_v9 }
 0x1f5   :  { %1684 = vpow2.f32 %v1350_v10 }
 0x1ff   :  { %v1679_v11 = vpop.eup %1678 }
 0x200   :  { %v1681_v12 = vpop.eup %1680  ;;  %v1360_v13 = vadd.f32 1.0, %v1679_v11 }
 0x201   :  { %v1683_v14 = vpop.eup %1682  ;;  %v1362_v15 = vadd.f32 1.0, %v1681_v12 }
 0x202   :  { %v1685_v16 = vpop.eup %1684  ;;  %1686 = vrcp.f32 %v1360_v13  ;;  %v1361_v17 = vadd.f32 1.0, %v1683_v14 }
 0x203   :  { %1688 = vrcp.f32 %v1362_v15  ;;  %v1363_v18 = vadd.f32 1.0, %v1685_v16 }
 0x204   :  { %1690 = vrcp.f32 %v1361_v17 }
 0x205   :  { %1692 = vrcp.f32 %v1363_v18 }
 0x20b   :  { %v1288_v27 = vpop.f32.mrf.mxu0  ;;  %v1329_v28 = vpop.f32.mrf.mxu1 }
 0x20c   :  { %v1289_v29 = vadd.f32 %v1288_v27, %v831_v23  ;;  %v1330_v30 = vadd.f32 %v1329_v28, %v839_v24 }
 0x20d   :  { %v1290_v31 = vpop.f32.mrf.mxu0  ;;  %v1331_v32 = vpop.f32.mrf.mxu1 }
 0x20e   :  { %v1340_v33 = vsub.f32 0.0, %v1289_v29  ;;  %v1342_v34 = vsub.f32 0.0, %v1330_v30  ;;  %v1291_v35 = vadd.f32 %v1290_v31, %v835_v25  ;;  %v1332_v36 = vadd.f32 %v1331_v32, %v843_v26 }
 0x20f   :  { %v1687_v37 = vpop.eup %1686  ;;  %v1292_v38 = vpop.f32.mrf.mxu0 }
 0x210   :  { %v1333_v39 = vpop.f32.mrf.mxu1  ;;  %v1689_v40 = vpop.eup %1688  ;;  %1376 = vst [vmem:[%s1862_s5] sm:$0xff] %v1687_v37  ;;  %v1352_v41 = vmul.f32 1.442695, %v1340_v33  ;;  %v1356_v42 = vmul.f32 1.442695, %v1342_v34  ;;  %v1341_v43 = vsub.f32 0.0, %v1291_v35  ;;  %v1343_v44 = vsub.f32 0.0, %v1332_v36 }
 0x211   :  { %v1691_v45 = vpop.eup %1690  ;;  %1378 = vst [vmem:[%s1862_s5 + $0x10] sm:$0xff] %v1689_v40  ;;  %v1293_v46 = vpop.f32.mrf.mxu0 }
 0x212   :  { %v1334_v47 = vpop.f32.mrf.mxu1  ;;  %v1693_v48 = vpop.eup %1692  ;;  %1377 = vst [vmem:[%s1862_s5 + $0x8] sm:$0xff] %v1691_v45  ;;  %1694 = vpow2.f32 %v1352_v41  ;;  %v1354_v49 = vmul.f32 1.442695, %v1341_v43  ;;  %v1358_v50 = vmul.f32 1.442695, %v1343_v44 }
 0x213   :  { %1379 = vst [vmem:[%s1862_s5 + $0x18] sm:$0xff] %v1693_v48  ;;  %1696 = vpow2.f32 %v1356_v42 }
 0x214   :  { %1698 = vpow2.f32 %v1354_v49 }
 0x215   :  { %1700 = vpow2.f32 %v1358_v50 }
 0x21f   :  { %v1695_v51 = vpop.eup %1694 }
 0x220   :  { %v1697_v52 = vpop.eup %1696  ;;  %v1364_v53 = vadd.f32 1.0, %v1695_v51 }
 0x221   :  { %v1699_v54 = vpop.eup %1698  ;;  %v1366_v56 = vadd.f32 1.0, %v1697_v52 }
 0x222   :  { %v1701_v57 = vpop.eup %1700  ;;  %1702 = vrcp.f32 %v1364_v53  ;;  %v1365_v58 = vadd.f32 1.0, %v1699_v54 }
 0x223   :  { %1704 = vrcp.f32 %v1366_v56  ;;  %v1367_v59 = vadd.f32 1.0, %v1701_v57 }
 0x224   :  { %1706 = vrcp.f32 %v1365_v58 }
 0x225   :  { %1708 = vrcp.f32 %v1367_v59 }
 0x22f   :  { %v1703_v60 = vpop.eup %1702 }
 0x230   :  { %v1705_v55 = vpop.eup %1704  ;;  %1380 = vst [vmem:[%s1862_s5 + $0x20] sm:$0xff] %v1703_v60 }
 0x231   :  { %v1707_v61 = vpop.eup %1706  ;;  %1382 = vst [vmem:[%s1862_s5 + $0x30] sm:$0xff] %v1705_v55 }
 0x232   :  { %v1709_v62 = vpop.eup %1708  ;;  %1381 = vst [vmem:[%s1862_s5 + $0x28] sm:$0xff] %v1707_v61 }
 0x233   :  { %1383 = vst [vmem:[%s1862_s5 + $0x38] sm:$0xff] %v1709_v62 }
 0x234   :  { %1388 = vsyncpa [#allocation3], 1 }
 0x235   :  { %1389 = vsyncpa [#allocation5], 1 }

</bundles_post_ra>
